<compile_context>
chip_gen: v7x
topology: tpu7x:2x2x1
jax: 0.10.0
libtpu: 0.0.40
codegen_flags: <defaults>
</compile_context>

<pallas_src>
import jax
import jax.numpy as jnp
from jax.experimental import pallas as pl
from jax.experimental.pallas import tpu as pltpu


def _dma_gather_kernel(ids_ref, w_hbm_ref, o_ref, copy_sem):
    # ids_ref:   (padded_n,) int32 in SMEM (scalar-prefetched token ids)
    # w_hbm_ref: (vocab, embed_dim) embedding table, left in HBM (pl.ANY)
    # o_ref:     (token_block, embed_dim) output block in VMEM
    # copy_sem:  one DMA semaphore shared by every row copy in this block
    blk = pl.program_id(0)
    tb = o_ref.shape[0]
    base = blk * tb

    # Start one row DMA per token.  All copies share copy_sem and have equal
    # size, so waiting tb times afterwards drains them all.  (If the DMA queue
    # fills, issue simply stalls -- still correct.)
    @pl.loop(0, tb)
    def _(r):
        tok = ids_ref[base + r]
        pltpu.make_async_copy(w_hbm_ref.at[tok], o_ref.at[r], copy_sem).start()

    # Wait for all row copies (each wait decrements by one row's byte count).
    @pl.loop(0, tb)
    def _(r):
        pltpu.make_async_copy(w_hbm_ref.at[0], o_ref.at[r], copy_sem).wait()


def _round_up(x, m):
    return ((x + m - 1) // m) * m


def embedding_lookup(ids, weight, *, max_token_block=512):
    """out[..., :] = weight[ids[...], :] via a Pallas TPU DMA-gather kernel."""
    vocab, dim = weight.shape
    orig_shape = ids.shape

    flat = jnp.asarray(ids, jnp.int32).reshape(-1)
    # torch.nn.Embedding errors on out-of-range ids; we clamp instead.
    flat = jnp.clip(flat, 0, vocab - 1)
    n = flat.shape[0]

    # token_block: multiple of 8 sublanes; single block for small inputs,
    # several 512-row blocks for large ones (bigger blocks -> fewer grid steps
    # and denser output writeback; VMEM cost is only 2 * tb * dim * itemsize).
    tb = min(_round_up(n, 8), max_token_block)
    padded_n = _round_up(n, tb)
    if padded_n != n:
        flat = jnp.pad(flat, (0, padded_n - n))          # pad ids with id 0

    grid = (padded_n // tb,)

    out = pl.pallas_call(
        _dma_gather_kernel,
        out_shape=jax.ShapeDtypeStruct((padded_n, dim), weight.dtype),
        grid_spec=pltpu.PrefetchScalarGridSpec(
            num_scalar_prefetch=1,                        # ids -> SMEM
            grid=grid,
            in_specs=[pl.BlockSpec(memory_space=pl.ANY)],  # table stays in HBM
            out_specs=pl.BlockSpec((tb, dim), lambda i, ids: (i, 0)),
            scratch_shapes=[pltpu.SemaphoreType.DMA(())],
        ),
        compiler_params=pltpu.CompilerParams(
            dimension_semantics=("parallel",)),
    )(flat, weight)

    return out[:n].reshape(*orig_shape, dim)


def embedding_packable(inputs, weight):
    """Pallas equivalent of EmbeddingPackable.forward.

    inputs: either an int id tensor, or (padded_ids, lengths) standing in for
    a torch PackedSequence.  The "packed" branch returns (embedded, lengths);
    rows past `lengths` are embeddings of the pad id and must be masked
    downstream (a re-packed PackedSequence would drop them).
    """
    if isinstance(inputs, tuple):
        padded_ids, lengths = inputs
        return embedding_lookup(padded_ids, weight), lengths
    return embedding_lookup(inputs, weight)


if __name__ == "__main__":
    vocab, embed_dim = 1024, 128
    batch, seq = 2, 8

    key = jax.random.PRNGKey(0)
    k_w, k_ids, k_len = jax.random.split(key, 3)

    weight = jax.random.normal(k_w, (vocab, embed_dim), dtype=jnp.float32)
    ids = jax.random.randint(k_ids, (batch, seq), 0, vocab, dtype=jnp.int32)
    lengths = jax.random.randint(k_len, (batch,), 1, seq + 1, dtype=jnp.int32)

    # "Packed" branch: (padded_ids, lengths) stand-in for a PackedSequence.
    emb_packed, out_lengths = embedding_packable((ids, lengths), weight)
    # Plain tensor branch.
    emb_plain = embedding_packable(ids, weight)

    emb_packed = jax.block_until_ready(emb_packed)
    emb_plain = jax.block_until_ready(emb_plain)

    ref = weight[ids]                                     # pure-JAX reference
    assert emb_plain.shape == (batch, seq, embed_dim)
    assert jnp.array_equal(out_lengths, lengths)
    assert jnp.array_equal(emb_plain, ref)                # gather is bit-exact
    assert jnp.array_equal(emb_packed, ref)

    print("KERNEL_OK")
</pallas_src>

<mosaic_0001>
module attributes {stable_mosaic.version = 11 : i64} {
  func.func @_dma_gather_kernel(%arg0: i32, %arg1: memref<16xi32, #tpu.memory_space<smem>>, %arg2: memref<1024x128xf32, #tpu.memory_space<any>>, %arg3: memref<16x128xf32, #tpu.memory_space<vmem>>, %arg4: memref<!tpu.dma_semaphore, #tpu.memory_space<semaphore_mem>>) attributes {dimension_semantics = [#tpu.dimension_semantics<parallel>], iteration_bounds = array<i64: 1>, scalar_prefetch = 1 : i64, scratch_operands = 1 : i64, tpu.core_type = #tpu.core_type<tc>, window_params = [{}, {transform_indices = @transform_1, window_bounds = array<i64: 16, 128>}]} {
    %c16_i32 = arith.constant 16 : i32
    %0 = arith.muli %arg0, %c16_i32 : i32
    %c0_i32 = arith.constant 0 : i32
    %c16_i32_0 = arith.constant 16 : i32
    %1 = arith.addi %c0_i32, %c16_i32_0 : i32
    %c1_i32 = arith.constant 1 : i32
    scf.for %arg5 = %c0_i32 to %1 step %c1_i32  : i32 {
      %c1_i32_6 = arith.constant 1 : i32
      %3 = arith.muli %arg5, %c1_i32_6 : i32
      %c0_i32_7 = arith.constant 0 : i32
      %4 = arith.addi %c0_i32_7, %3 : i32
      %5 = arith.addi %0, %4 : i32
      %6 = arith.index_cast %5 : i32 to index
      %7 = memref.load %arg1[%6] : memref<16xi32, #tpu.memory_space<smem>>
      %c0_i32_8 = arith.constant 0 : i32
      %8 = tpu.memref_slice %arg2[%7, %c0_i32_8] : memref<1024x128xf32, #tpu.memory_space<any>> -> memref<1x128xf32, #tpu.memory_space<any>>
      %9 = tpu.memref_squeeze %8 : memref<1x128xf32, #tpu.memory_space<any>> -> memref<128xf32, #tpu.memory_space<any>>
      %c0_i32_9 = arith.constant 0 : i32
      %10 = tpu.memref_slice %arg3[%4, %c0_i32_9] : memref<16x128xf32, #tpu.memory_space<vmem>> -> memref<1x128xf32, #tpu.memory_space<vmem>>
      %11 = tpu.memref_squeeze %10 : memref<1x128xf32, #tpu.memory_space<vmem>> -> memref<128xf32, #tpu.memory_space<vmem>>
      tpu.enqueue_dma source(%9 : memref<128xf32, #tpu.memory_space<any>>) target(%11 : memref<128xf32, #tpu.memory_space<vmem>>) target_semaphore(%arg4 : memref<!tpu.dma_semaphore, #tpu.memory_space<semaphore_mem>>)
    }
    %c16_i32_1 = arith.constant 16 : i32
    %c0_i32_2 = arith.constant 0 : i32
    %c16_i32_3 = arith.constant 16 : i32
    %2 = arith.addi %c0_i32_2, %c16_i32_3 : i32
    %c1_i32_4 = arith.constant 1 : i32
    scf.for %arg5 = %c0_i32_2 to %2 step %c1_i32_4  : i32 {
      %c1_i32_6 = arith.constant 1 : i32
      %3 = arith.muli %arg5, %c1_i32_6 : i32
      %c0_i32_7 = arith.constant 0 : i32
      %4 = arith.addi %c0_i32_7, %3 : i32
      %c0_i32_8 = arith.constant 0 : i32
      %c0_i32_9 = arith.constant 0 : i32
      %5 = tpu.memref_slice %arg2[%c0_i32_8, %c0_i32_9] : memref<1024x128xf32, #tpu.memory_space<any>> -> memref<1x128xf32, #tpu.memory_space<any>>
      %6 = tpu.memref_squeeze %5 : memref<1x128xf32, #tpu.memory_space<any>> -> memref<128xf32, #tpu.memory_space<any>>
      %c0_i32_10 = arith.constant 0 : i32
      %7 = tpu.memref_slice %arg3[%4, %c0_i32_10] : memref<16x128xf32, #tpu.memory_space<vmem>> -> memref<1x128xf32, #tpu.memory_space<vmem>>
      %8 = tpu.memref_squeeze %7 : memref<1x128xf32, #tpu.memory_space<vmem>> -> memref<128xf32, #tpu.memory_space<vmem>>
      tpu.wait_dma2 semaphore(%arg4 : memref<!tpu.dma_semaphore, #tpu.memory_space<semaphore_mem>>) src(%6 : memref<128xf32, #tpu.memory_space<any>>) dst(%8 : memref<128xf32, #tpu.memory_space<vmem>>)
    }
    %c16_i32_5 = arith.constant 16 : i32
    return
  }
  func.func @transform_1(%arg0: i32, %arg1: memref<16xi32, #tpu.memory_space<smem>>) -> (i32, i32) {
    %c0_i32 = arith.constant 0 : i32
    %c0_i32_0 = arith.constant 0 : i32
    return %arg0, %c0_i32 : i32, i32
  }
}

</mosaic_0001>

<bundles_post_ra>
// kernel: tpu_custom_call.1
= control target key start
LH: loop header
LB: loop body
LE: loop exit
PB: predicated region body
PF: predicated region fallthrough
CT: control target
= control target key end

     0   :  { %s248_s0 = inlined_call_operand.hbm [shape: s32[16], index: 0, kind: input, shape index: {}]   ;;  %s249_s1 = inlined_call_operand.hbm [shape: f32[1024,128], index: 1, kind: input, shape index: {}]   ;;  %s250_s2 = inlined_call_operand.hbm [shape: f32[16,128], index: 2, kind: output, shape index: {}]  }
   0x1   :  { %s100_s11 = scalar_lea.hbm %s248_s0, 16 }
   0x2   :  { %p101_p0 = scmp.ne.s32.totalorder %s248_s0, %s100_s11  ;;  %p104_p1 = scmp.lt.u32.totalorder %s100_s11, %s248_s0 }
   0x4   :  { %p106_p2 = pnand %p104_p1, %p101_p0 }
   0x6   :  { %109 = shalt.err (!%p106_p2)  }
   0x7   :  { %s178_s16 = smov [#allocation4]  }
   0x8   :  { %8 = dma.hbm_to_smem %s248_s0, 16, %s178_s16, [#allocation3] }
   0x9   :  { %164 = dma.done.wait [#allocation3], 16 }
   0xa   :  { %165 = vsyncadd [#allocation3], 4294967280 }
   0xb   :  { %10 = sfence }
   0xc   :  { %11 = vsyncpa [#allocation6], 0  ;;  %s209_s19 = smov 0  }
   0xd LB: > { %s20_s20 = sld [smem:[#allocation4 + %s172_s19]]  ;;  %s23_s21 = scalar_lea.vmem [#allocation5], %s172_s19  ;;  %s172_s19 = sphi %s209_s19, %s18_s19  }
   0xe   : > { %s31_s22 = sshll.u32 %s23_s21, 4  ;;  %s112_s29 = scalar_lea.hbm %s249_s1, 16384  ;;  %s32_s22 = int_to_ptr.vmem [resolvable:$true] %s31_s22 }
  0x13   : > { %s78_s23 = sshll.u32 %s20_s20, 4 }
  0x14   : > { %s22_s25 = scalar_lea.hbm %s249_s1, %s78_s23 }
  0x15   : > { %s110_s26 = scalar_lea.hbm %s22_s25, 16  ;;  %p113_p4 = scmp.lt.u32.totalorder %s22_s25, %s249_s1 }
  0x16   : > { %p111_p3 = scmp.ne.s32.totalorder %s22_s25, %s110_s26  ;;  %p114_p5 = scmp.lt.u32.totalorder %s112_s29, %s110_s26 }
  0x17   : > { %p116_p7 = scmp.lt.u32.totalorder %s110_s26, %s22_s25 }
  0x18   : > { %p115_p6 = por %p114_p5, %p113_p4 }
  0x1a   : > { %p117_p8 = por %p116_p7, %p115_p6 }
  0x1c   : > { %p118_p9 = pnand %p117_p8, %p111_p3 }
  0x1e   : > { %121 = shalt.err (!%p118_p9)  }
  0x1f   : > { %s122_s4 = scalar_lea.vmem %s32_s22, 16  ;;  %s179_s5 = smov [#allocation5]  }
  0x20   : > { %p123_p10 = scmp.ne.s32.totalorder %s32_s22, %s122_s4  ;;  %s124_s6 = sshll.u32 %s179_s5, 4  ;;  %s225_s6 = int_to_ptr.vmem [resolvable:$false] %s124_s6 }
  0x21   : > { %s126_s7 = scalar_lea.vmem %s225_s6, 256  ;;  %p127_p11 = scmp.lt.s32.totalorder %s32_s22, %s225_s6 }
  0x22   : > { %p128_p12 = scmp.lt.s32.totalorder %s126_s7, %s122_s4 }
  0x24   : > { %p129_p13 = por %p128_p12, %p127_p11 }
  0x26   : > { %p130_p0 = pnand %p129_p13, %p123_p10 }
  0x28   : > { %133 = shalt.err (!%p130_p0)  }
  0x29   : > { %34 = dma.hbm_to_vmem [thread:$0]  %s22_s25, 16, %s32_s22, [#allocation2] }
  0x2a   : > { %s18_s19 = sadd.s32 1, %s172_s19  }
  0x2b   : > { %p15_p1 = scmp.ge.s32.totalorder %s18_s19, 16  }
  0x2c   :  { %s174_s8 = smov (%p15_p1), 0  }
  0x2d   :  { %17 = sbr.rel (!%p15_p1) target bundleno = 13 (0xd), region = 40 }
  0x34 LB: > { %166 = dma.done.wait [#allocation2], 16  ;;  %s176_s8 = sphi %s174_s8, %s40_s8  }
  0x35   : > { %167 = vsyncadd [#allocation2], 4294967280  ;;  %s40_s8 = sadd.s32 1, %s176_s8  }
  0x36   : > { %p37_p2 = scmp.ge.s32.totalorder %s40_s8, 16  }
  0x37   :  { %p135_p3 = scmp.ne.s32.totalorder (%p37_p2), %s225_s6, %s126_s7  ;;  %p139_p4 = scmp.lt.s32.totalorder (%p37_p2), %s225_s6, %s225_s6 }
  0x38   :  { %39 = sbr.rel (!%p37_p2) target bundleno = 52 (0x34), region = 51  ;;  %p140_p5 = scmp.lt.s32.totalorder (%p37_p2), %s126_s7, %s126_s7 }
  0x3a   :  { %p141_p6 = por (%p37_p2), %p140_p5, %p139_p4 }
  0x3c   :  { %p142_p7 = pnand (%p37_p2), %p141_p6, %p135_p3 }
  0x3f   :  { %145 = shalt.err (!%p142_p7)
}
  0x40   :  { %s146_s10 = scalar_lea.hbm %s250_s2, 256 }
  0x41   :  { %p147_p8 = scmp.ne.s32.totalorder %s250_s2, %s146_s10  ;;  %p150_p9 = scmp.lt.u32.totalorder %s146_s10, %s250_s2 }
  0x43   :  { %p152_p10 = pnand %p150_p9, %p147_p8 }
  0x45   :  { %155 = shalt.err (!%p152_p10)
}
  0x46   :  { %s180_s15 = smov 128   ;;  %s181_s16 = smov 8  }
  0x47   :  { %54 = dma.vmem_to_hbm [thread:$0]  %s225_s6, 256, %s250_s2, [#allocation6], %s180_s15, %s180_s15, %s181_s16  }
  0x48   :  { %168 = dma.done.wait [#allocation6], 256  }
  0x49   :  { %169 = vsyncadd [#allocation6], 4294967040 }
  0x4a   :  { %58 = vsyncpa [#allocation6], 1 }
  0x4b   :  { %59 = vsyncmov [#allocation2] }
  0x4e   :  { %s60_s19 = vpop.sfrf %59 }
  0x4f   :  { %p79_p11 = scmp.ne.s32.totalorder %s60_s19, 0 }
  0x51   :  { %64 = shalt.err (%p79_p11)  }

</bundles_post_ra>
